<compile_context>
chip_gen: v7x
topology: tpu7x:2x2x1
jax: 0.10.0
libtpu: 0.0.40
codegen_flags: <defaults>
</compile_context>

<pallas_src>
import functools

import jax
import jax.numpy as jnp
from jax.experimental import pallas as pl
from jax.experimental.pallas import tpu as pltpu

EPS = 1e-6


def _round_up(x: int, m: int) -> int:
    return ((x + m - 1) // m) * m


def _cdiv(a: int, b: int) -> int:
    return -(-a // b)


def _sublane_packing(dtype) -> int:
    """Minimum second-to-last block dim for the dtype (8/16/32)."""
    itemsize = jnp.dtype(dtype).itemsize
    return max(8, 32 // itemsize)


def _ln_rows_kernel(x_ref, alpha_ref, bias_ref, o_ref, *, f_true: int):
    """LayerNorm over the last dim of a (TM, F) row tile."""
    x = x_ref[...].astype(jnp.float32)                       # (TM, F)

    mean = jnp.sum(x, axis=-1, keepdims=True) * (1.0 / f_true)
    centered = x - mean

    # Unbiased variance (divide by F-1), matching torch.Tensor.std default.
    inv_nm1 = (1.0 / (f_true - 1)) if f_true > 1 else float("nan")
    var_unbiased = jnp.sum(centered * centered, axis=-1, keepdims=True) * inv_nm1
    std = jnp.sqrt(var_unbiased)

    # (std + eps) denominator — intentional, matches the PyTorch module.
    inv = pl.reciprocal(std + EPS)                            # EUP slot, exact

    alpha = alpha_ref[...].astype(jnp.float32)                # (1, F)
    bias = bias_ref[...].astype(jnp.float32)                  # (1, F)

    y = alpha * (centered * inv) + bias
    o_ref[...] = y.astype(o_ref.dtype)


def _pick_block_rows(n_rows: int, f: int, dtype) -> int:
    """Row-tile size: ~2 MiB of f32 footprint, dtype-aligned, >= ~8 grid steps."""
    pack = _sublane_packing(dtype)
    if n_rows <= pack:
        return n_rows                                         # full dim is legal
    # ~2 MiB of f32 intermediates per block (kernel upcasts to f32).
    target_rows = ((2 << 20) // max(1, f * 4)) // pack * pack
    target_rows = max(pack, target_rows)
    # Guarantee >= ~8 blocks so ("parallel",) can feed both v7x TensorCores.
    cap = _round_up(_cdiv(n_rows, 8), pack)
    tm = max(pack, min(target_rows, cap))
    if tm >= n_rows:
        return n_rows
    return tm


def decoder_forward(x, encoder_output, enc_mask, dec_mask, alpha, bias):
    """Pallas implementation of Decoder.forward with an empty layer list.

    x:              (B, S, F)
    encoder_output: (B, S_enc, F)   -- unused (no decoder-block layers)
    enc_mask, dec_mask              -- unused (no decoder-block layers)
    alpha, bias:    (F,)            -- LayerNormalization parameters
    """
    del encoder_output, enc_mask, dec_mask       # consumed only by opaque layers
    B, S, F = x.shape
    n_rows = B * S

    x2 = x.reshape(n_rows, F)                    # view, no HBM pass
    alpha2 = alpha.reshape(1, F)
    bias2 = bias.reshape(1, F)

    tm = _pick_block_rows(n_rows, F, x2.dtype)
    grid = (pl.cdiv(n_rows, tm),)

    # VMEM accounting: double-buffered in + out blocks, params, f32 temps.
    itemsize = jnp.dtype(x2.dtype).itemsize
    block_in = tm * F * itemsize
    block_out = tm * F * itemsize
    f32_temps = 6 * tm * F * 4
    params = 4 * F * itemsize
    vmem_limit = 2 * block_in + 2 * block_out + f32_temps + params + (4 << 20)
    vmem_limit = int(min(max(vmem_limit, 16 << 20), 64 << 20))

    # NOTE: input_output_aliases={0: 0} would save an HBM allocation, but the
    # caller may still reference x (as the self-test below does), so it is off.
    out = pl.pallas_call(
        functools.partial(_ln_rows_kernel, f_true=F),
        out_shape=jax.ShapeDtypeStruct((n_rows, F), x.dtype),
        grid_spec=pltpu.PrefetchScalarGridSpec(
            num_scalar_prefetch=0,
            grid=grid,
            in_specs=[
                pl.BlockSpec((tm, F), lambda i: (i, 0)),
                pl.BlockSpec((1, F), lambda i: (0, 0)),
                pl.BlockSpec((1, F), lambda i: (0, 0)),
            ],
            out_specs=pl.BlockSpec((tm, F), lambda i: (i, 0)),
        ),
        compiler_params=pltpu.CompilerParams(
            dimension_semantics=("parallel",),
            vmem_limit_bytes=vmem_limit,
        ),
    )(x2, alpha2, bias2)

    return out.reshape(B, S, F)


def _reference(x, alpha, bias):
    mean = jnp.mean(x, axis=-1, keepdims=True)
    # unbiased std, matching torch.Tensor.std
    std = jnp.sqrt(
        jnp.sum((x - mean) ** 2, axis=-1, keepdims=True) / (x.shape[-1] - 1)
    )
    return alpha * (x - mean) / (std + EPS) + bias


if __name__ == "__main__":
    B, S, F = 2, 8, 32

    key = jax.random.PRNGKey(0)
    kx, kenc = jax.random.split(key)

    x = jax.random.normal(kx, (B, S, F), dtype=jnp.float32)
    encoder_output = jax.random.normal(kenc, (B, S, F), dtype=jnp.float32)
    enc_mask = jnp.ones((B, 1, 1, S), dtype=jnp.float32)
    dec_mask = jnp.ones((B, 1, S, S), dtype=jnp.float32)

    # Deterministic parameter init (matches nn.Parameter(torch.ones/zeros)).
    alpha = jnp.ones((F,), dtype=jnp.float32)
    bias = jnp.zeros((F,), dtype=jnp.float32)

    out = decoder_forward(x, encoder_output, enc_mask, dec_mask, alpha, bias)
    out = jax.block_until_ready(out)

    ref = _reference(x, alpha, bias)
    assert out.shape == (B, S, F)
    assert jnp.allclose(out, ref, atol=1e-5, rtol=1e-5), "mismatch vs reference"

    print("KERNEL_OK")
</pallas_src>

<mosaic_0001>
module attributes {stable_mosaic.version = 11 : i64} {
  func.func @_ln_rows_kernel(%arg0: i32, %arg1: memref<8x32xf32, #tpu.memory_space<vmem>>, %arg2: memref<1x32xf32, #tpu.memory_space<vmem>>, %arg3: memref<1x32xf32, #tpu.memory_space<vmem>>, %arg4: memref<8x32xf32, #tpu.memory_space<vmem>>) attributes {dimension_semantics = [#tpu.dimension_semantics<parallel>], iteration_bounds = array<i64: 2>, scalar_prefetch = 0 : i64, scratch_operands = 0 : i64, tpu.core_type = #tpu.core_type<tc>, window_params = [{transform_indices = @transform_0, window_bounds = array<i64: 8, 32>}, {pipeline_mode = #tpu.pipeline_mode<synchronous>, transform_indices = @transform_1, window_bounds = array<i64: 1, 32>}, {pipeline_mode = #tpu.pipeline_mode<synchronous>, transform_indices = @transform_2, window_bounds = array<i64: 1, 32>}, {transform_indices = @transform_3, window_bounds = array<i64: 8, 32>}]} {
    %c0 = arith.constant 0 : index
    %c0_0 = arith.constant 0 : index
    %0 = vector.load %arg1[%c0, %c0_0] : memref<8x32xf32, #tpu.memory_space<vmem>>, vector<8x32xf32>
    %cst = arith.constant dense<0.000000e+00> : vector<8xf32>
    %1 = vector.multi_reduction <add>, %0, %cst [1] : vector<8x32xf32> to vector<8xf32>
    %2 = vector.shape_cast %1 : vector<8xf32> to vector<8x1xf32>
    %cst_1 = arith.constant 3.125000e-02 : f32
    %3 = vector.broadcast %cst_1 : f32 to vector<8x1xf32>
    %4 = arith.mulf %2, %3 : vector<8x1xf32>
    %5 = vector.broadcast %4 : vector<8x1xf32> to vector<8x32xf32>
    %6 = arith.subf %0, %5 : vector<8x32xf32>
    %7 = arith.mulf %6, %6 : vector<8x32xf32>
    %cst_2 = arith.constant dense<0.000000e+00> : vector<8xf32>
    %8 = vector.multi_reduction <add>, %7, %cst_2 [1] : vector<8x32xf32> to vector<8xf32>
    %9 = vector.shape_cast %8 : vector<8xf32> to vector<8x1xf32>
    %cst_3 = arith.constant 0.0322580636 : f32
    %10 = vector.broadcast %cst_3 : f32 to vector<8x1xf32>
    %11 = arith.mulf %9, %10 : vector<8x1xf32>
    %12 = math.sqrt %11 : vector<8x1xf32>
    %cst_4 = arith.constant 9.99999997E-7 : f32
    %13 = vector.broadcast %cst_4 : f32 to vector<8x1xf32>
    %14 = arith.addf %12, %13 : vector<8x1xf32>
    %15 = tpu.reciprocal %14 : vector<8x1xf32> -> vector<8x1xf32>
    %c0_5 = arith.constant 0 : index
    %c0_6 = arith.constant 0 : index
    %16 = vector.load %arg2[%c0_5, %c0_6] : memref<1x32xf32, #tpu.memory_space<vmem>>, vector<1x32xf32>
    %c0_7 = arith.constant 0 : index
    %c0_8 = arith.constant 0 : index
    %17 = vector.load %arg3[%c0_7, %c0_8] : memref<1x32xf32, #tpu.memory_space<vmem>>, vector<1x32xf32>
    %18 = vector.broadcast %15 : vector<8x1xf32> to vector<8x32xf32>
    %19 = arith.mulf %6, %18 : vector<8x32xf32>
    %20 = vector.broadcast %16 : vector<1x32xf32> to vector<8x32xf32>
    %21 = arith.mulf %20, %19 : vector<8x32xf32>
    %22 = vector.broadcast %17 : vector<1x32xf32> to vector<8x32xf32>
    %23 = arith.addf %21, %22 : vector<8x32xf32>
    %c0_9 = arith.constant 0 : index
    %c0_10 = arith.constant 0 : index
    %24 = vector.load %arg4[%c0_9, %c0_10] : memref<8x32xf32, #tpu.memory_space<vmem>>, vector<8x32xf32>
    tpu.vector_store %arg4[%c0_9, %c0_10], %23 {strides = array<i32>} : memref<8x32xf32, #tpu.memory_space<vmem>>, vector<8x32xf32>,
    return
  }
  func.func @transform_0(%arg0: i32) -> (i32, i32) {
    %c0_i32 = arith.constant 0 : i32
    %c0_i32_0 = arith.constant 0 : i32
    return %arg0, %c0_i32 : i32, i32
  }
  func.func @transform_1(%arg0: i32) -> (i32, i32) {
    %c0_i32 = arith.constant 0 : i32
    %c0_i32_0 = arith.constant 0 : i32
    %c0_i32_1 = arith.constant 0 : i32
    return %c0_i32, %c0_i32_0 : i32, i32
  }
  func.func @transform_2(%arg0: i32) -> (i32, i32) {
    %c0_i32 = arith.constant 0 : i32
    %c0_i32_0 = arith.constant 0 : i32
    %c0_i32_1 = arith.constant 0 : i32
    return %c0_i32, %c0_i32_0 : i32, i32
  }
  func.func @transform_3(%arg0: i32) -> (i32, i32) {
    %c0_i32 = arith.constant 0 : i32
    %c0_i32_0 = arith.constant 0 : i32
    return %arg0, %c0_i32 : i32, i32
  }
}

</mosaic_0001>

<bundles_post_ra>
// kernel: tpu_custom_call.1
= control target key start
LH: loop header
LB: loop body
LE: loop exit
PB: predicated region body
PF: predicated region fallthrough
CT: control target
= control target key end

     0   :  { %8 = vsyncpa [#allocation3], 0  ;;  %s667_s0 = inlined_call_operand.hbm [shape: f32[16,32], index: 0, kind: input, shape index: {}]   ;;  %s668_s1 = inlined_call_operand.vmem [shape: f32[1,32], index: 1, kind: input, shape index: {}]   ;;  %s669_s2 = inlined_call_operand.vmem [shape: f32[1,32], index: 2, kind: input, shape index: {}]   ;;  %s670_s3 = inlined_call_operand.hbm [shape: f32[16,32], index: 3, kind: output, shape index: {}]  }
   0x1   :  { %10 = vsyncpa [#allocation3 + $0x1], 0 }
   0x2   :  { %11 = vsyncpa [#allocation4], 0 }
   0x3   :  { %13 = vsyncpa [#allocation4 + $0x1], 0  ;;  %s493_s12 = smov 0   ;;  %s495_s13 = smov 0  }
   0x4   :  { %s497_s14 = smov 0   ;;  %s499_s15 = smov 0  }
   0x5 LB: > { %s514_s16 = sadd.s32 4294967295, %s469_s15   ;;  %s309_s17 = sadd.s32 4294967294, %s469_s15   ;;  %s469_s15 = sphi %s499_s15, %s685_s15   ;;  %s465_s14 = sphi %s497_s14, %s684_s14   ;;  %s461_s13 = sphi %s495_s13, %s683_s13   ;;  %s457_s12 = sphi %s493_s12, %s682_s12  }
   0x6   : > { %s518_s18 = sadd.s32 1, %s469_s15   ;;  %s26_s19 = sadd.s32 1, %s465_s14 }
   0x7   : > { %s23_s20 = ssub.s32 %s469_s15, %s518_s18  ;;  %p33_p0 = scmp.ne.s32.totalorder %s465_s14, %s461_s13 }
   0x8   : > { %p24_p1 = scmp.eq.s32.totalorder %s23_s20, 0  ;;  %p34_p2 = scmp.eq.s32.totalorder %s469_s15, 0 }
   0x9   : > { %p39_p3 = scmp.ne.s32.totalorder %s461_s13, %s457_s12  ;;  %p40_p4 = scmp.eq.s32.totalorder %s514_s16, 0 }
   0xa   : > { %s530_s21 = scalar_select %p24_p1, %s465_s14, %s26_s19  }
   0xb   : > { %p532_p5 = por %p34_p2, %p33_p0  ;;  %p536_p6 = por %p40_p4, %p39_p3 }
   0xc   : > { %p105_p7 = scmp.eq.s32.totalorder %s514_s16, 1  ;;  %p111_p8 = scmp.eq.s32.totalorder %s309_s17, 1 }
   0xd   : > { %p335_p10 = scmp.lt.s32.totalorder %s469_s15, 2  ;;  %s137_s26 = sand.u32 1, %s465_s14  }
   0xe   : > { %p543_p11 = por %p105_p7, %p33_p0  ;;  %p547_p12 = por %p111_p8, %p39_p3 }
   0xf   : > { %s313_s27 = sshll.u32 %s469_s15, 7  ;;  %s312_s28 = sshll.u32 %s137_s26, 3 }
  0x10   : > { %s674_s24 = scalar_select %p543_p11, 1, 0 }
  0x11   : > { %s675_s25 = scalar_select %p547_p12, 1, 0 }
  0x12   : > { %s556_s4 = scalar_lea.hbm %s667_s0, %s313_s27  ;;  %s141_s5 = scalar_lea.vmem [#allocation2], %s312_s28 }
  0x13   : > { %s148_s6 = sshll.u32 %s141_s5, 4  ;;  %p560_p13 = pnand %p335_p10, %p532_p5  ;;  %s564_s6 = int_to_ptr.vmem [resolvable:$true] %s148_s6 }
  0x14   : > { %s138_s8 = scalar_lea.sflag [#allocation3], %s137_s26  ;;  %s373_s9 = scalar_lea.hbm %s556_s4, 128 }
  0x15   : > { %p374_p2 = scmp.ne.s32.totalorder %s556_s4, %s373_s9  ;;  %p375_p3 = pneg %p560_p13 }
  0x16   : > { %s378_s17 = scalar_lea.hbm %s667_s0, 256  ;;  %p379_p5 = scmp.lt.u32.totalorder %s556_s4, %s667_s0 }
  0x17   : > { %p376_p4 = pnand %p375_p3, %p374_p2  ;;  %p380_p8 = scmp.lt.u32.totalorder %s378_s17, %s373_s9 }
  0x18   : > { %p382_p9 = scmp.lt.u32.totalorder %s373_s9, %s556_s4 }
  0x19   : > { %p377_p7 = pneg %p376_p4  ;;  %p381_p10 = por %p380_p8, %p379_p5 }
  0x1b   : > { %p383_p0 = por %p382_p9, %p381_p10 }
  0x1d   : > { %p384_p1 = pnand %p383_p0, %p377_p7 }
  0x1f   : > { %387 = shalt.err (!%p384_p1)
}
  0x20   : > { %s388_s22 = scalar_lea.vmem %s564_s6, 128  ;;  %s471_s26 = smov [#allocation2]  }
  0x21   : > { %p389_p2 = scmp.ne.s32.totalorder %s564_s6, %s388_s22  ;;  %s393_s27 = sshll.u32 %s471_s26, 4  ;;  %s394_s27 = int_to_ptr.vmem [resolvable:$false] %s393_s27 }
  0x22   : > { %s395_s28 = scalar_lea.vmem %s394_s27, 256  ;;  %p396_p11 = scmp.lt.s32.totalorder %s564_s6, %s394_s27 }
  0x23   : > { %p391_p4 = pnand %p389_p2, %p375_p3  ;;  %p397_p5 = scmp.lt.s32.totalorder %s395_s28, %s388_s22 }
  0x25   : > { %p392_p12 = pneg %p391_p4  ;;  %p398_p8 = por %p397_p5, %p396_p11 }
  0x27   : > { %p399_p9 = pnand %p398_p8, %p392_p12 }
  0x29   : > { %402 = shalt.err (!%p399_p9)
}
  0x2a   : > { %330 = dma.hbm_to_vmem [thread:$0]  (!%p560_p13), %s556_s4, 128, %s564_s6, %s138_s8  }
  0x2b   : > { %p677_p0 = scmp.lt.s32.totalorder %s469_s15, 3  ;;  %p678_p1 = scmp.ge.s32.totalorder %s469_s15, 1 }
  0x2d   : > { %p154_p3 = pnand %p678_p1, %p677_p0 }
  0x2e   : > { %s598_s29 = sand.u32 (!%p154_p3), 1, %s461_s13  }
  0x2f   : > { %157 = sbr.rel (%p154_p3) target bundleno = 398 (0x18e), region = 32  ;;  %s315_s30 = sshll.u32 (!%p154_p3), %s598_s29, 3 }
  0x30   : > { %s160_s5 = scalar_lea.sflag (!%p154_p3), [#allocation3], %s598_s29  ;;  %s163_s7 = scalar_lea.vmem (!%p154_p3), [#allocation2], %s315_s30 }
  0x36   : > { %448 = dma.done.wait (%p536_p6), %s160_s5, 128  }
  0x37   : > { %450 = vsyncadd (%p536_p6), %s160_s5, 4294967168  ;;  %vm187_vm0 = vcmask 261120   ;;  %v186_v0 = vld [vmem:[%s163_s7] sm:$0xff]  ;;  %s320_s9 = sshll.u32 %s514_s16, 7  ;;  %s185_s10 = scalar_lea.vmem [#allocation5], %s315_s30 }
  0x38   : > { %v188_v1 = vsel %vm187_vm0, %v186_v0, 0.0  ;;  %v317_v16 = vld [vmem:[%s668_s1] ss:$0 sm:$0xff]  ;;  %s239_s11 = sshll.u32 %s185_s10, 4  ;;  %s622_s20 = scalar_lea.hbm %s670_s3, %s320_s9  ;;  %s624_s11 = int_to_ptr.vmem [resolvable:$true] %s239_s11 }
  0x39   : > { %189 = vadd.xlane.f32.xlu0 %v188_v1  ;;  %v318_v18 = vld [vmem:[%s669_s2] ss:$0 sm:$0xff]  ;;  %s226_s22 = scalar_lea.sflag [#allocation4], %s598_s29  ;;  %s403_s26 = scalar_lea.vmem %s624_s11, 128 }
  0x3a   : > { %p404_p6 = scmp.ne.s32.totalorder %s624_s11, %s403_s26  ;;  %p679_p11 = scmp.ne.s32.totalorder %s674_s24, 0 }
  0x3b   : > { %s472_s16 = smov [#allocation5]  }
  0x3c   : > { %p405_p12 = pnand %p404_p6, %p679_p11  ;;  %s407_s27 = sshll.u32 %s472_s16, 4  ;;  %s408_s27 = int_to_ptr.vmem [resolvable:$false] %s407_s27 }
  0x3d   : > { %s409_s28 = scalar_lea.vmem %s408_s27, 256  ;;  %p410_p7 = scmp.lt.s32.totalorder %s624_s11, %s408_s27 }
  0x3e   : > { %p406_p13 = pneg %p405_p12  ;;  %p411_p10 = scmp.lt.s32.totalorder %s409_s28, %s403_s26 }
  0x40   : > { %p412_p2 = por %p411_p10, %p410_p7 }
  0x42   : > { %p413_p4 = pnand %p412_p2, %p406_p13 }
  0xc6   : > { %v190_v2 = vpop.xlane.xlu0 %189 }
  0xc7   : > { %v191_v3 = vmul.f32 0.03125, %v190_v2 }
  0xc9   : > { %v192_v4 = vsub.f32 %v186_v0, %v191_v3 }
  0xcb   : > { %v193_v5 = vmul.f32 %v192_v4, %v192_v4 }
  0xcd   : > { %v194_v6 = vsel %vm187_vm0, %v193_v5, 0.0 }
  0xce   : > { %195 = vadd.xlane.f32.xlu0 %v194_v6 }
 0x15b   : > { %v196_v7 = vpop.xlane.xlu0 %195 }
 0x15c   : > { %v197_v8 = vmul.f32 0.032258064, %v196_v7 }
 0x15e   : > { %369 = vrsqrt.f32 %v197_v8  ;;  %vm200_vm1 = vcmp.eq.f32.partialorder %v197_v8, inf  ;;  %v203_v11 = vand.u32 2147483648, %v197_v8  ;;  %vm202_vm2 = vcmp.eq.f32.partialorder %v197_v8, 0.0 }
 0x168   : > { %v370_v9 = vpop.eup %369 }
 0x169   : > { %v199_v10 = vmul.f32 %v370_v9, %v197_v8 }
 0x16b   : > { %v201_v12 = vsel %vm200_vm1, %v197_v8, %v199_v10 }
 0x16c   : > { %v204_v13 = vsel %vm202_vm2, %v203_v11, %v201_v12 }
 0x16d   : > { %v205_v14 = vadd.f32 1e-06, %v204_v13 }
 0x16f   : > { %371 = vrcp.f32 %v205_v14 }
 0x179   : > { %v372_v15 = vpop.eup %371 }
 0x17a   : > { %v209_v17 = vmul.f32 %v372_v15, %v192_v4 }
 0x17c   : > { %v216_v19 = vmul.f32 %v317_v16, %v209_v17 }
 0x17e   : > { %v223_v20 = vadd.f32 %v318_v18, %v216_v19 }
 0x180   : > { %224 = vst.msk [vmem:[%s185_s10] sm:$0xff] %vm187_vm0, %v223_v20 }
 0x181   : > { %416 = shalt.err (!%p413_p4)
}
 0x182   : > { %s417_s29 = scalar_lea.hbm %s622_s20, 128  ;;  %s421_s7 = scalar_lea.hbm %s670_s3, 256 }
 0x183   : > { %p418_p5 = scmp.ne.s32.totalorder %s622_s20, %s417_s29  ;;  %p422_p0 = scmp.lt.u32.totalorder %s622_s20, %s670_s3 }
 0x184   : > { %p423_p1 = scmp.lt.u32.totalorder %s421_s7, %s417_s29  ;;  %p425_p6 = scmp.lt.u32.totalorder %s417_s29, %s622_s20 }
 0x185   : > { %p419_p8 = pnand %p418_p5, %p679_p11 }
 0x186   : > { %p424_p3 = por %p423_p1, %p422_p0 }
 0x187   : > { %p420_p9 = pneg %p419_p8 }
 0x188   : > { %p426_p12 = por %p425_p6, %p424_p3 }
 0x18a   : > { %p427_p13 = pnand %p426_p12, %p420_p9 }
 0x18c   : > { %430 = shalt.err (!%p427_p13)
}
 0x18d   : > { %325 = dma.vmem_to_hbm [thread:$0]  (%p679_p11), %s624_s11, 128, %s622_s20, %s226_s22  }
 0x18e PF: > { %s251_s6 = sand.u32 1, %s457_s12   ;;  %p680_p7 = scmp.ne.s32.totalorder %s675_s25, 0 }
 0x18f   : > { %p681_p10 = scmp.ge.s32.totalorder %s469_s15, 2  ;;  %s252_s8 = scalar_lea.sflag [#allocation4], %s251_s6 }
 0x191   : > { %p332_p2 = pnand %p681_p10, %p680_p7 }
 0x193   : > { %452 = dma.done.wait (!%p332_p2), %s252_s8, 128  }
 0x194   : > { %454 = vsyncadd (!%p332_p2), %s252_s8, 4294967168  ;;  %p16_p4 = scmp.ge.s32.totalorder %s518_s18, 4   ;;  %s682_s12 = smov %s461_s13 }
 0x195   : > { %s683_s13 = smov %s465_s14  ;;  %s684_s14 = smov %s530_s21 }
 0x196   : > { %s685_s15 = smov %s518_s18  ;;  %18 = sbr.rel (!%p16_p4) target bundleno = 5 (0x5), region = 77 }
 0x19d   :  { %257 = vsyncpa [#allocation3], 1 }
 0x19e   :  { %259 = vsyncpa [#allocation3 + $0x1], 1 }
 0x19f   :  { %260 = vsyncpa [#allocation4], 1 }
 0x1a0   :  { %262 = vsyncpa [#allocation4 + $0x1], 1 }

</bundles_post_ra>
